<compile_context>
chip_gen: v7x
topology: tpu7x:2x2x1
jax: 0.10.0
libtpu: 0.0.40
codegen_flags: <defaults>
</compile_context>

<pallas_src>
import functools
import math

import jax
import jax.numpy as jnp
from jax.experimental import pallas as pl
from jax.experimental.pallas import tpu as pltpu


# ---------------------------------------------------------------------------
# Interpolation weight matrices (built once on the host, trace-time constants)
# ---------------------------------------------------------------------------
def _interp_matrix(dst, src, mode, dtype):
    """(dst, src) interpolation weights along one axis."""
    d = jnp.arange(dst, dtype=jnp.float32)[:, None]
    s = jnp.arange(src)[None, :]
    if mode == "nearest":
        # PyTorch legacy 'nearest': src_idx = floor(dst_idx * float(src/dst)).
        idx = jnp.floor(d * jnp.float32(src / dst)).astype(jnp.int32)
        idx = jnp.clip(idx, 0, src - 1)
        return (idx == s).astype(dtype)
    if mode == "bilinear":
        # Module passes align_corners=True for bilinear.
        if dst == 1:
            pos = jnp.zeros((dst, 1), jnp.float32)
        else:
            pos = d * jnp.float32((src - 1) / (dst - 1))
        m = jnp.maximum(0.0, 1.0 - jnp.abs(pos - s.astype(jnp.float32)))
        return m.astype(dtype)
    raise NotImplementedError(f"upscale_mode={mode!r}")


def _combined_matrix(hs, hx, ws, wx, mode, dtype):
    """(Hx*Wx, Hs*Ws) matrix G s.t. up_flat = x_flat @ G (separable resize)."""
    mh = _interp_matrix(hs, hx, mode, jnp.float32)      # (Hs, Hx)
    mw = _interp_matrix(ws, wx, mode, jnp.float32)      # (Ws, Wx)
    g = jnp.einsum("ih,jw->hwij", mh, mw)               # (Hx, Wx, Hs, Ws)
    return g.reshape(hx * wx, hs * ws).astype(dtype)


# ---------------------------------------------------------------------------
# VMEM budgeting (padded sizes, generation-aware)
# ---------------------------------------------------------------------------
def _padded_bytes(rows, cols, dtype):
    """Bytes of a (rows, cols) VMEM tile after (sublane, 128-lane) padding."""
    it = jnp.dtype(dtype).itemsize
    sub = 8 * max(1, 4 // it)            # 8 for f32, 16 for bf16, 32 for int8
    rp = -(-rows // sub) * sub
    cp = -(-cols // 128) * 128
    return rp * cp * it


def _vmem_budget():
    cap = 64 * 1024 * 1024               # conservative default (v7x physical)
    try:
        cap = int(pltpu.get_tpu_info().vmem_capacity_bytes)
    except Exception:
        pass
    limit = min(cap // 2, 48 * 1024 * 1024)   # 32 MiB on v7x, 48 MiB on v5e/v6e
    budget = (limit * 3) // 4                 # 24 MiB on v7x, 36 MiB on v5e/v6e
    return budget, limit


def _pick_channel_tile(n, cx, cs, hxwx, hsws, x_dtype, g_dtype, budget):
    """Channel tile dividing both cx and cs, sublane-aligned, VMEM-bounded,
    and small enough to keep >= 4 grid steps for pipelining/megacore."""
    g = math.gcd(cx, cs)
    divs = [d for d in range(1, g + 1) if g % d == 0]
    aligned = [d for d in divs if d % 8 == 0]
    # TODO(synk): non-8-aligned / ragged channel counts need masked last blocks.
    cands = sorted(aligned or divs, reverse=True)

    fixed = 2 * _padded_bytes(hxwx, hsws, g_dtype)       # weight matrix

    def step_bytes(tc):
        return (fixed
                + 2 * _padded_bytes(tc, hxwx, x_dtype)       # x block (dbl-buf)
                + 2 * _padded_bytes(tc, hsws, x_dtype)       # skip block
                + 2 * _padded_bytes(tc, hsws, x_dtype)       # out block
                + 2 * _padded_bytes(tc, hsws, jnp.float32))  # f32 acc / temp

    fitting = [t for t in cands if step_bytes(t) <= budget] or [cands[-1]]
    good = [t for t in fitting if n * (cx // t + cs // t) >= 4]
    return max(good) if good else max(fitting)


# ---------------------------------------------------------------------------
# Kernel
# ---------------------------------------------------------------------------
def _make_kernel(gx):
    def kernel(g_ref, x_ref, skip_ref, out_ref):
        # g_ref:    (Hx*Wx, Hs*Ws) resize weights (fetched once; const index_map)
        # x_ref:    (tc, Hx*Wx)    channel tile of x (flattened spatial)
        # skip_ref: (tc, Hs*Ws)    channel tile of x_skip (flattened spatial)
        # out_ref:  (tc, Hs*Ws)    channel tile of the fused concat output
        c = pl.program_id(1)

        @pl.when(c < gx)
        def _():
            # One lane-dense MXU matmul does the whole 2-D resize; for
            # 'nearest' G is one-hot so this is an exact gather.
            up = jnp.dot(x_ref[...], g_ref[...],
                         preferred_element_type=jnp.float32)
            out_ref[...] = up.astype(out_ref.dtype)

        @pl.when(c >= gx)
        def _():
            # Skip half: straight lane-dense copy into its concat slot.
            out_ref[...] = skip_ref[...]

    return kernel


# ---------------------------------------------------------------------------
# Wrapper: forward(x, x_skip) of UpsampleConcat (use_deconv=False)
# ---------------------------------------------------------------------------
@functools.partial(jax.jit, static_argnames=("mode",))
def upsample_concat(x, x_skip, *, mode="nearest"):
    n, cx, hx, wx = x.shape
    n2, cs, hs, ws = x_skip.shape
    assert n == n2, "batch dims must match"
    assert x.dtype == x_skip.dtype, "dtypes must match"
    dt = x.dtype
    hxwx, hsws = hx * wx, hs * ws

    # 'nearest' weights are one-hot -> exact in the input dtype (no casts);
    # 'bilinear' weights stay in f32 for single-rounding accuracy.
    g_dtype = dt if mode == "nearest" else jnp.float32
    g_mat = _combined_matrix(hs, hx, ws, wx, mode, g_dtype)

    budget, limit = _vmem_budget()
    if 2 * _padded_bytes(hxwx, hsws, g_dtype) > budget // 2:
        # TODO(synk): large spatial extents need a separable two-pass kernel;
        # decoder-stage shapes exercised here fit the fused weight matrix.
        raise NotImplementedError("spatial extent too large for fused resize matrix")

    tc = _pick_channel_tile(n, cx, cs, hxwx, hsws, dt, g_dtype, budget)
    gx, gs = cx // tc, cs // tc
    grid = (n, gx + gs)

    x_flat = x.reshape(n, cx, hxwx)
    skip_flat = x_skip.reshape(n, cs, hsws)

    out_flat = pl.pallas_call(
        _make_kernel(gx),
        out_shape=jax.ShapeDtypeStruct((n, cx + cs, hsws), dt),
        grid=grid,
        in_specs=[
            # Weights: constant block index -> DMA'd once, reused every step.
            pl.BlockSpec((hxwx, hsws), lambda i, c: (0, 0)),
            # x tile: clamped while the grid is in the skip region (no re-DMA).
            pl.BlockSpec((None, tc, hxwx),
                         lambda i, c: (i, jnp.minimum(c, gx - 1), 0)),
            # skip tile: clamped while the grid is in the upsample region.
            pl.BlockSpec((None, tc, hsws),
                         lambda i, c: (i, jnp.maximum(c - gx, 0), 0)),
        ],
        # Lane-dense store straight into the fused concat destination.
        out_specs=pl.BlockSpec((None, tc, hsws), lambda i, c: (i, c, 0)),
        compiler_params=pltpu.CompilerParams(
            dimension_semantics=("parallel", "parallel"),
            vmem_limit_bytes=limit,
        ),
    )(g_mat, x_flat, skip_flat)

    return out_flat.reshape(n, cx + cs, hs, ws)


# ---------------------------------------------------------------------------
# Pure-JAX reference mirroring F.interpolate + torch.cat semantics
# ---------------------------------------------------------------------------
def _reference(x, x_skip, mode="nearest"):
    n, cx, hx, wx = x.shape
    _, cs, hs, ws = x_skip.shape
    if mode == "nearest":
        ri = jnp.floor(jnp.arange(hs, dtype=jnp.float32) * (hx / hs)).astype(jnp.int32)
        ci = jnp.floor(jnp.arange(ws, dtype=jnp.float32) * (wx / ws)).astype(jnp.int32)
        ri = jnp.clip(ri, 0, hx - 1)
        ci = jnp.clip(ci, 0, wx - 1)
        up = x[:, :, ri, :][:, :, :, ci]
    else:  # bilinear, align_corners=True (what the module passes)
        mh = _interp_matrix(hs, hx, "bilinear", jnp.float32)
        mw = _interp_matrix(ws, wx, "bilinear", jnp.float32)
        up = jnp.einsum("ih,nchw,jw->ncij", mh, x.astype(jnp.float32), mw)
        up = up.astype(x.dtype)
    return jnp.concatenate([up, x_skip], axis=1)


if __name__ == "__main__":
    key = jax.random.PRNGKey(0)
    k1, k2 = jax.random.split(key)
    # Small U-Net decoder stage: low-res features x, 2x-resolution skip.
    x = jax.random.normal(k1, (2, 8, 8, 8), dtype=jnp.float32)
    x_skip = jax.random.normal(k2, (2, 8, 16, 16), dtype=jnp.float32)

    # Default module config: nearest upsample + channel concat.
    out = jax.block_until_ready(upsample_concat(x, x_skip, mode="nearest"))
    ref = _reference(x, x_skip, mode="nearest")
    assert out.shape == (2, 16, 16, 16), out.shape
    assert jnp.allclose(out, ref, atol=1e-6, rtol=1e-6), "nearest mismatch"

    # Bilinear (align_corners=True) path.
    out_b = jax.block_until_ready(upsample_concat(x, x_skip, mode="bilinear"))
    ref_b = _reference(x, x_skip, mode="bilinear")
    assert jnp.allclose(out_b, ref_b, atol=1e-4, rtol=1e-4), "bilinear mismatch"

    print("KERNEL_OK")
</pallas_src>

<mosaic_0001>
module attributes {stable_mosaic.version = 11 : i64} {
  func.func @kernel(%arg0: i32, %arg1: i32, %arg2: memref<64x256xf32, #tpu.memory_space<vmem>>, %arg3: memref<1x8x64xf32, #tpu.memory_space<vmem>>, %arg4: memref<1x8x256xf32, #tpu.memory_space<vmem>>, %arg5: memref<1x8x256xf32, #tpu.memory_space<vmem>>) attributes {dimension_semantics = [#tpu.dimension_semantics<parallel>, #tpu.dimension_semantics<parallel>], iteration_bounds = array<i64: 2, 2>, scalar_prefetch = 0 : i64, scratch_operands = 0 : i64, tpu.core_type = #tpu.core_type<tc>, window_params = [{pipeline_mode = #tpu.pipeline_mode<synchronous>, transform_indices = @transform_0, window_bounds = array<i64: 64, 256>}, {transform_indices = @transform_1, window_bounds = array<i64: 1, 8, 64>}, {transform_indices = @transform_2, window_bounds = array<i64: 1, 8, 256>}, {transform_indices = @transform_3, window_bounds = array<i64: 1, 8, 256>}]} {
    %c1_i32 = arith.constant 1 : i32
    %0 = arith.cmpi slt, %arg1, %c1_i32 : i32
    %1 = arith.extui %0 : i1 to i32
    %c0_i32 = arith.constant 0 : i32
    %2 = arith.cmpi ne, %1, %c0_i32 : i32
    scf.if %2 {
      %c0 = arith.constant 0 : index
      %c0_2 = arith.constant 0 : index
      %c0_3 = arith.constant 0 : index
      %6 = vector.load %arg3[%c0, %c0_2, %c0_3] : memref<1x8x64xf32, #tpu.memory_space<vmem>>, vector<1x8x64xf32>
      %7 = vector.shape_cast %6 : vector<1x8x64xf32> to vector<8x64xf32>
      %c0_4 = arith.constant 0 : index
      %c0_5 = arith.constant 0 : index
      %8 = vector.load %arg2[%c0_4, %c0_5] : memref<64x256xf32, #tpu.memory_space<vmem>>, vector<64x256xf32>
      %cst = arith.constant dense<0.000000e+00> : vector<8x256xf32>
      %9 = tpu.matmul %7, %8, %cst {dimension_numbers = #tpu.dot_dimension_numbers<[1], [0], [0], [1], [0, 0, 1, 1], [], []>} : vector<8x64xf32>, vector<64x256xf32>, vector<8x256xf32> -> vector<8x256xf32>
      %c0_6 = arith.constant 0 : index
      %c0_7 = arith.constant 0 : index
      %c0_8 = arith.constant 0 : index
      %10 = vector.load %arg5[%c0_6, %c0_7, %c0_8] : memref<1x8x256xf32, #tpu.memory_space<vmem>>, vector<1x8x256xf32>
      %11 = vector.shape_cast %10 : vector<1x8x256xf32> to vector<8x256xf32>
      %12 = vector.shape_cast %9 : vector<8x256xf32> to vector<1x8x256xf32>
      tpu.vector_store %arg5[%c0_6, %c0_7, %c0_8], %12 {strides = array<i32>} : memref<1x8x256xf32, #tpu.memory_space<vmem>>, vector<1x8x256xf32>,
    } else {
    }
    %c1_i32_0 = arith.constant 1 : i32
    %3 = arith.cmpi sge, %arg1, %c1_i32_0 : i32
    %4 = arith.extui %3 : i1 to i32
    %c0_i32_1 = arith.constant 0 : i32
    %5 = arith.cmpi ne, %4, %c0_i32_1 : i32
    scf.if %5 {
      %c0 = arith.constant 0 : index
      %c0_2 = arith.constant 0 : index
      %c0_3 = arith.constant 0 : index
      %6 = vector.load %arg4[%c0, %c0_2, %c0_3] : memref<1x8x256xf32, #tpu.memory_space<vmem>>, vector<1x8x256xf32>
      %7 = vector.shape_cast %6 : vector<1x8x256xf32> to vector<8x256xf32>
      %c0_4 = arith.constant 0 : index
      %c0_5 = arith.constant 0 : index
      %c0_6 = arith.constant 0 : index
      %8 = vector.load %arg5[%c0_4, %c0_5, %c0_6] : memref<1x8x256xf32, #tpu.memory_space<vmem>>, vector<1x8x256xf32>
      %9 = vector.shape_cast %8 : vector<1x8x256xf32> to vector<8x256xf32>
      %10 = vector.shape_cast %7 : vector<8x256xf32> to vector<1x8x256xf32>
      tpu.vector_store %arg5[%c0_4, %c0_5, %c0_6], %10 {strides = array<i32>} : memref<1x8x256xf32, #tpu.memory_space<vmem>>, vector<1x8x256xf32>,
    } else {
    }
    return
  }
  func.func @transform_0(%arg0: i32, %arg1: i32) -> (i32, i32) {
    %c0_i32 = arith.constant 0 : i32
    %c0_i32_0 = arith.constant 0 : i32
    %c0_i32_1 = arith.constant 0 : i32
    return %c0_i32, %c0_i32_0 : i32, i32
  }
  func.func @transform_1(%arg0: i32, %arg1: i32) -> (i32, i32, i32) {
    %c0_i32 = arith.constant 0 : i32
    %0 = arith.minsi %arg1, %c0_i32 : i32
    %c0_i32_0 = arith.constant 0 : i32
    %c0_i32_1 = arith.constant 0 : i32
    return %arg0, %0, %c0_i32_0 : i32, i32, i32
  }
  func.func @transform_2(%arg0: i32, %arg1: i32) -> (i32, i32, i32) {
    %c1_i32 = arith.constant 1 : i32
    %0 = arith.subi %arg1, %c1_i32 : i32
    %c0_i32 = arith.constant 0 : i32
    %1 = arith.maxsi %0, %c0_i32 : i32
    %c0_i32_0 = arith.constant 0 : i32
    %c0_i32_1 = arith.constant 0 : i32
    return %arg0, %1, %c0_i32_0 : i32, i32, i32
  }
  func.func @transform_3(%arg0: i32, %arg1: i32) -> (i32, i32, i32) {
    %c0_i32 = arith.constant 0 : i32
    %c0_i32_0 = arith.constant 0 : i32
    return %arg0, %arg1, %c0_i32 : i32, i32, i32
  }
}

</mosaic_0001>

<bundles_post_ra>
// kernel: upsample_concat.1
= control target key start
LH: loop header
LB: loop body
LE: loop exit
PB: predicated region body
PF: predicated region fallthrough
CT: control target
= control target key end

     0   :  { %s633_s12 = smov 0   ;;  %s635_s13 = smov 0   ;;  %s764_s0 = inlined_call_operand.vmem [shape: f32[64,256], index: 0, kind: input, shape index: {}]   ;;  %s765_s1 = inlined_call_operand.vmem [shape: f32[2,8,64], index: 1, kind: input, shape index: {}]   ;;  %s766_s2 = inlined_call_operand.vmem [shape: f32[2,8,256], index: 2, kind: input, shape index: {}]   ;;  %s767_s3 = inlined_call_operand.vmem [shape: f32[2,16,256], index: 3, kind: output, shape index: {}]  }
   0x1   :  { %s637_s14 = smov 0   ;;  %s639_s15 = smov 0  }
   0x2   :  { %s641_s16 = smov 0  }
   0x3 LB: > { %s22_s17 = sadd.s32 1, %s602_s14  ;;  %s25_s18 = sadd.s32 1, %s606_s15  ;;  %s610_s16 = sphi %s641_s16, %s13_s16   ;;  %s606_s15 = sphi %s639_s15, %s771_s15   ;;  %s602_s14 = sphi %s637_s14, %s770_s14   ;;  %s598_s13 = sphi %s635_s13, %s769_s13   ;;  %s594_s12 = sphi %s633_s12, %s768_s12  }
   0x4   : > { %p23_p0 = scmp.ge.s32.totalorder %s22_s17, 2  ;;  %p492_p1 = scmp.ge.s32.totalorder %s610_s16, 1 }
   0x5   : > { %p191_p2 = scmp.lt.s32.totalorder %s610_s16, 5 }
   0x6   : > { %s773_s17 = smov (%p23_p0, %s22_s17), 0  ;;  %s775_s18 = smov (!%p23_p0, %s25_s18), %s606_s15 }
   0x7   : > { %p192_p3 = pnand %p492_p1, %p191_p2  ;;  %p27_p4 = scmp.ge.s32.totalorder %s775_s18, 2 }
   0x8   : > { %p235_p5 = scmp.lt.s32.totalorder (!%p192_p3), %s594_s12, 0  ;;  %p237_p6 = scmp.lt.s32.totalorder (!%p192_p3), %s598_s13, 1 }
   0x9   : > { %s777_s18 = smov (%p27_p4, %s775_s18), 0  ;;  %195 = sbr.rel (%p192_p3) target bundleno = 257 (0x101), region = 32 }
   0xa   : > { %p263_p7 = scmp.lt.s32.totalorder (!%p192_p3), %s594_s12, 1  ;;  %p509_p8 = scmp.ge.s32.totalorder (!%p192_p3), %s594_s12, 1 }
  0x10   : > { %s236_s19 = scalar_select %p235_p5, %s594_s12, 0 }
  0x11   : > { %s779_s13 = smov (!%p237_p6, %s598_s13), 1  ;;  %v276_v0 = vld [vmem:[%s764_s0 + $0x8] sm:$0xff] (!%p509_p8)  ;;  %v278_v1 = vld [vmem:[%s764_s0 + $0x18] sm:$0xff] (!%p509_p8)  ;;  %v275_v2 = vld [vmem:[%s764_s0] sm:$0xff] (!%p509_p8)  ;;  %v612_v7 = vmov (!%p509_p8), 0.0   ;;  %vm291_vm0 = vcmask (!%p509_p8), 523264  }
  0x12   : > { %s781_s19 = smov (!%p235_p5, %s236_s19), 0  ;;  %s514_s20 = sshll.u32 %s779_s13, 4  ;;  %v515_v3 = vpack.c.bf16 (!%p509_p8), %v278_v1, %v276_v0  ;;  %v277_v4 = vld [vmem:[%s764_s0 + $0x10] sm:$0xff] (!%p509_p8)  ;;  %v280_v5 = vld [vmem:[%s764_s0 + $0x28] sm:$0xff] (!%p509_p8)  ;;  %v282_v6 = vld [vmem:[%s764_s0 + $0x38] sm:$0xff] (!%p509_p8)  ;;  %359 = vmatprep.mubr.f32.mxu0 (!%p509_p8), %v612_v7 }
  0x13   : > { %s241_s21 = sadd.s32 %s781_s19, %s779_s13  ;;  %s671_s24 = scalar_lea.vmem %s766_s2, %s514_s20  ;;  %v517_v8 = vpack.c.bf16 (!%p509_p8), %v277_v4, %v275_v2  ;;  %v519_v9 = vpack.c.bf16 (!%p509_p8), %v282_v6, %v280_v5  ;;  %v279_v10 = vld [vmem:[%s764_s0 + $0x20] sm:$0xff] (!%p509_p8)  ;;  %v281_v11 = vld [vmem:[%s764_s0 + $0x30] sm:$0xff] (!%p509_p8)  ;;  %v284_v12 = vld [vmem:[%s764_s0 + $0x48] sm:$0xff] (!%p509_p8) }
  0x14   : > { %s673_s25 = sshll.u32 %s241_s21, 3  ;;  %s507_s29 = sshll.u32 %s779_s13, 2  ;;  %516 = vmatprep.subr.bf16.mxu0 (!%p509_p8), %v515_v3  ;;  %v286_v13 = vld [vmem:[%s764_s0 + $0x58] sm:$0xff] (!%p509_p8)  ;;  %v521_v14 = vpack.c.bf16 (!%p509_p8), %v281_v11, %v279_v10  ;;  %v283_v16 = vld [vmem:[%s764_s0 + $0x40] sm:$0xff] (!%p509_p8)  ;;  %v285_v17 = vld [vmem:[%s764_s0 + $0x50] sm:$0xff] (!%p509_p8) }
  0x15   : > { %s243_s28 = scalar_lea.vmem %s765_s1, %s673_s25  ;;  %273 = sbr.rel (%p509_p8) target bundleno = 250 (0xfa), region = 36  ;;  %518 = vmatpush1.bf16.msra.mxu0 (!%p509_p8), %v517_v8  ;;  %v523_v15 = vpack.c.bf16 (!%p509_p8), %v286_v13, %v284_v12  ;;  %v288_v18 = vld [vmem:[%s764_s0 + $0x68] sm:$0xff] (!%p509_p8)  ;;  %v290_v19 = vld [vmem:[%s764_s0 + $0x78] sm:$0xff] (!%p509_p8)  ;;  %v525_v20 = vpack.c.bf16 (!%p509_p8), %v285_v17, %v283_v16  ;;  %v287_v22 = vld [vmem:[%s764_s0 + $0x60] sm:$0xff] (!%p509_p8) }
  0x16   : > { %s264_s30 = scalar_select %p263_p7, %s594_s12, 1 }
  0x17   : > { %520 = vmatprep.subr.bf16.mxu0 (!%p509_p8), %v519_v9  ;;  %v527_v21 = vpack.c.bf16 (!%p509_p8), %v290_v19, %v288_v18  ;;  %v289_v23 = vld [vmem:[%s764_s0 + $0x70] sm:$0xff] (!%p509_p8)  ;;  %v274_v25 = vld [vmem:[%s243_s28] sm:$0xff] (!%p509_p8) }
  0x18   : > { %s506_s4 = sshll.u32 %s264_s30, 1  ;;  %v529_v24 = vpack.c.bf16 (!%p509_p8), %v289_v23, %v287_v22 }
  0x19   : > { %s267_s5 = sadd.s32 %s507_s29, %s506_s4  ;;  %522 = vmatpush1.bf16.msra.mxu0 (!%p509_p8), %v521_v14 }
  0x1a   : > { %s508_s6 = sshll.u32 %s267_s5, 3  ;;  %524 = vmatprep.subr.bf16.mxu0 (!%p509_p8), %v523_v15 }
  0x1b   : > { %s685_s9 = scalar_lea.vmem %s767_s3, %s508_s6 }
  0x1d   : > { %526 = vmatpush1.bf16.msra.mxu0 %v525_v20 }
  0x1e   : > { %528 = vmatprep.subr.bf16.mxu0 %v527_v21 }
  0x21   : > { %530 = vmatpush1.bf16.msra.mxu0 %v529_v24 }
  0x24   : > { %510 = vmatmul.mubr.msk.f32.vlgmr.msra.gmra.mrb[0].mxu0 %vm291_vm0, %v274_v25 }
  0xf7   : > { %v361_v26 = vpop.f32.mrb[0].mxu0 }
  0xf8   : > { %366 = vst [vmem:[%s685_s9] sm:$0xff] %v361_v26  ;;  %v363_v27 = vpop.f32.mrb[1].mxu0 }
  0xf9   : > { %367 = vst [vmem:[%s685_s9 + $0x8] sm:$0xff] %v363_v27 }
  0xfa PF: > { %371 = sbr.rel (%p263_p7) target bundleno = 257 (0x101), region = 40  ;;  %v372_v28 = vld [vmem:[%s671_s24] sm:$0xff] (!%p263_p7)  ;;  %v373_v29 = vld [vmem:[%s671_s24 + $0x8] sm:$0xff] (!%p263_p7) }
  0xfb   : > { %374 = vst [vmem:[%s685_s9] sm:$0xff] (!%p263_p7), %v372_v28  ;;  %375 = vst [vmem:[%s685_s9 + $0x8] sm:$0xff] (!%p263_p7), %v373_v29 }
 0x101 PF: > { %s13_s16 = sadd.s32 1, %s610_s16   ;;  %s768_s12 = smov %s602_s14 }
 0x102   : > { %p10_p9 = scmp.ge.s32.totalorder %s13_s16, 6   ;;  %s769_s13 = smov %s606_s15 }
 0x103   : > { %s770_s14 = smov %s773_s17  ;;  %s771_s15 = smov %s777_s18 }
 0x104   :  { %12 = sbr.rel (!%p10_p9) target bundleno = 3 (0x3), region = 73 }

</bundles_post_ra>
